<compile_context>
chip_gen: v7x
topology: tpu7x:2x2x1
jax: 0.10.0
libtpu: 0.0.40
codegen_flags: <defaults>
</compile_context>

<pallas_src>
import jax
import jax.numpy as jnp
from jax import lax
from jax.experimental import pallas as pl
from jax.experimental.pallas import tpu as pltpu

DEFAULT_TOKEN_TILE = 256  # fills the MXU M dim and amortizes grid-step overhead


def _round_up(x, m):
    return ((x + m - 1) // m) * m


def _vmem_caps():
    """(physical_vmem_bytes, usable_budget_bytes) for the current chip."""
    cap = 64 << 20  # conservative fallback (v7x has 64 MiB / TensorCore)
    try:
        info = pltpu.get_tpu_info()
        for attr in ("vmem_capacity_bytes", "vmem_size_bytes", "vmem_bytes"):
            val = getattr(info, attr, None)
            if val:
                cap = int(val)
                break
    except Exception:
        pass
    return cap, (cap * 3) // 4  # leave ~25% headroom for the compiler


# ---------------------------------------------------------------------------
# Path A: VMEM-resident table, one-hot @ table on the MXU (small/medium vocab).
# ---------------------------------------------------------------------------
def _embed_resident_kernel(idx_ref, table_ref, out_ref):
    # idx_ref:   (TOKEN_TILE, 1) int32 -- token ids on the sublane axis
    # table_ref: (Vp, D)               -- whole (padded) table, VMEM resident
    # out_ref:   (TOKEN_TILE, D)       -- gathered embeddings (written directly)
    idx = idx_ref[...]                                           # (TB, 1)
    vp = table_ref.shape[0]
    v_iota = lax.broadcasted_iota(jnp.int32, (idx.shape[0], vp), 1)
    onehot = (idx == v_iota).astype(table_ref.dtype)             # (TB, Vp)
    out_ref[...] = jnp.dot(
        onehot, table_ref[...], preferred_element_type=jnp.float32
    ).astype(out_ref.dtype)


# ---------------------------------------------------------------------------
# Path B: table stays in HBM; scalar-prefetched ids drive a DMA row gather.
# ---------------------------------------------------------------------------
def _embed_gather_kernel(ids_ref, table_hbm, out_ref, sem):
    # ids_ref:   (n_pad,) int32 in SMEM (scalar prefetch)
    # table_hbm: (Vp, D) ref left in HBM (memory_space=pl.ANY)
    # out_ref:   (TOKEN_TILE, D) VMEM output block (every row overwritten by DMA)
    # sem:       scalar DMA semaphore (all copies have identical byte counts)
    tb = out_ref.shape[0]
    base = pl.program_id(0) * tb

    @pl.loop(0, tb)
    def _issue(t):
        row = ids_ref[base + t]
        pltpu.make_async_copy(table_hbm.at[row], out_ref.at[t], sem).start()

    @pl.loop(0, tb)
    def _drain(t):
        # Same-shaped descriptor -> waits for one row's worth of bytes.
        pltpu.make_async_copy(table_hbm.at[0], out_ref.at[0], sem).wait()


def pallas_embedding(ids_flat, table, *, vocab_size=None,
                     token_tile=DEFAULT_TOKEN_TILE, path="auto"):
    """Embedding lookup: ids_flat [N] int32, table [Vp, D] -> [N, D].

    `table` may carry zero padding rows beyond `vocab_size` (padded once at
    module init).  Ids are clamped to [0, vocab_size); PyTorch would raise on
    out-of-range ids instead.
    """
    n = int(ids_flat.shape[0])
    v_pad, d = table.shape
    v = int(vocab_size) if vocab_size is not None else int(v_pad)
    itab = jnp.dtype(table.dtype).itemsize
    d_pad = _round_up(d, 128)
    cap, budget = _vmem_caps()

    # Token tile: big enough to amortize the ~0.35us grid-step overhead and fill
    # the MXU M dim; small enough that double-buffered out blocks fit VMEM.
    token_tile = min(token_tile, _round_up(max(n, 1), 8))
    while token_tile > 8 and 3 * token_tile * d_pad * 4 > budget // 2:
        token_tile //= 2
    token_tile = max(8, _round_up(token_tile, 8))

    n_pad = _round_up(max(n, 1), token_tile)
    ids_p = jnp.clip(ids_flat.astype(jnp.int32), 0, v - 1)
    ids_p = jnp.pad(ids_p, (0, n_pad - n))
    grid = (n_pad // token_tile,)

    # Conservative resident-path VMEM footprint (table counted twice for the
    # pipeline's buffering, out blocks double-buffered, ids lane-padded).
    resident_bytes = (
        2 * v_pad * d_pad * itab
        + 2 * token_tile * d_pad * itab
        + 2 * token_tile * 128 * 4
    )
    if path == "auto":
        path = "resident" if resident_bytes <= budget else "gather"

    if path == "resident":
        vmem_limit = int(min(cap - (4 << 20),
                             max(32 << 20, resident_bytes + (4 << 20))))
        out = pl.pallas_call(
            _embed_resident_kernel,
            out_shape=jax.ShapeDtypeStruct((n_pad, d), table.dtype),
            grid_spec=pltpu.PrefetchScalarGridSpec(
                num_scalar_prefetch=0,
                grid=grid,
                in_specs=[
                    pl.BlockSpec((token_tile, 1), lambda i: (i, 0)),
                    pl.BlockSpec((v_pad, d), lambda i: (0, 0)),  # VMEM resident
                ],
                out_specs=pl.BlockSpec((token_tile, d), lambda i: (i, 0)),
            ),
            compiler_params=pltpu.CompilerParams(
                dimension_semantics=("parallel",),
                vmem_limit_bytes=vmem_limit,
            ),
        )(ids_p.reshape(n_pad, 1), table)
    elif path == "gather":
        gather_bytes = 2 * token_tile * d_pad * itab
        vmem_limit = int(min(cap - (4 << 20),
                             max(32 << 20, gather_bytes + (4 << 20))))
        out = pl.pallas_call(
            _embed_gather_kernel,
            out_shape=jax.ShapeDtypeStruct((n_pad, d), table.dtype),
            grid_spec=pltpu.PrefetchScalarGridSpec(
                num_scalar_prefetch=1,
                grid=grid,
                in_specs=[pl.BlockSpec(memory_space=pl.ANY)],   # table in HBM
                out_specs=pl.BlockSpec((token_tile, d), lambda i, ids: (i, 0)),
                scratch_shapes=[pltpu.SemaphoreType.DMA(())],
            ),
            compiler_params=pltpu.CompilerParams(
                dimension_semantics=("arbitrary",),
                vmem_limit_bytes=vmem_limit,
            ),
        )(ids_p, table)
    else:
        raise ValueError(f"unknown path: {path!r}")

    return out[:n]


class EmbeddingPackable:
    """JAX/Pallas analogue of the PyTorch EmbeddingPackable wrapper.

    - plain path:  int array [B, T]                 -> [B, T, D]
    - packed path: tuple (ids [B, T], lengths [B])  -> ([B, T, D], lengths)
      PackedSequence has no JAX equivalent; the pad -> embed -> re-pack
      semantics are reproduced as padded embeddings plus the lengths vector
      (positions past each length hold the token-0 embedding, exactly the
      padded tensor PyTorch embeds before re-packing).
    """

    def __init__(self, table, *, path="auto"):
        v, d = table.shape
        self.num_embeddings = int(v)
        self.path = path
        # Pad the vocab axis ONCE (multiple-of-8 rows); per-call code never
        # re-pads / re-copies the table in HBM.
        v_pad = _round_up(v, 8)
        self.table = (jnp.pad(table, ((0, v_pad - v), (0, 0)))
                      if v_pad != v else table)

    def _embed(self, ids2d):
        b, t = ids2d.shape
        emb = pallas_embedding(ids2d.reshape(-1), self.table,
                               vocab_size=self.num_embeddings, path=self.path)
        return emb.reshape(b, t, -1)

    def __call__(self, inp):
        if isinstance(inp, tuple):
            ids, lengths = inp
            # TODO(synk): pack_padded_sequence / PackedSequence re-packing is a
            # host-side data-structure transform with no Pallas equivalent; we
            # return (padded embeddings, lengths) instead.
            return self._embed(ids), lengths
        return self._embed(inp)


if __name__ == "__main__":
    key = jax.random.PRNGKey(0)
    k_tab, k_ids, k2_tab, k2_ids, k3_tab, k3_ids = jax.random.split(key, 6)

    # --- Small, deterministic setup matching the module: vocab=32, D=128. ---
    V, D = 32, 128
    B, T = 2, 8
    table = jax.random.normal(k_tab, (V, D), dtype=jnp.float32)
    ids = jax.random.randint(k_ids, (B, T), 0, V, dtype=jnp.int32)
    lengths = jnp.array([T, T - 3], dtype=jnp.int32)

    model = EmbeddingPackable(table)
    out_plain = jax.block_until_ready(model(ids))
    out_packed, out_lens = model((ids, lengths))
    out_packed = jax.block_until_ready(out_packed)

    ref = jnp.take(table, ids, axis=0)
    assert out_plain.shape == (B, T, D)
    assert out_packed.shape == (B, T, D)
    assert jnp.allclose(out_plain, ref, atol=1e-5), "plain path mismatch"
    assert jnp.allclose(out_packed, ref, atol=1e-5), "packed path mismatch"
    assert jnp.array_equal(out_lens, lengths)

    # --- Larger resident-path case: multiple token tiles. ---
    V2, D2 = 600, 256
    B2, T2 = 3, 100
    table2 = jax.random.normal(k2_tab, (V2, D2), dtype=jnp.float32)
    ids2 = jax.random.randint(k2_ids, (B2, T2), 0, V2, dtype=jnp.int32)
    out2 = jax.block_until_ready(EmbeddingPackable(table2)(ids2))
    ref2 = jnp.take(table2, ids2, axis=0)
    assert out2.shape == (B2, T2, D2)
    assert jnp.allclose(out2, ref2, atol=1e-5), "resident path mismatch"

    # --- Exercise the HBM row-gather path (forced here; auto-selected whenever
    #     the table does not fit the per-generation VMEM budget). ---
    V3, D3 = 512, 128
    B3, T3 = 2, 40
    table3 = jax.random.normal(k3_tab, (V3, D3), dtype=jnp.float32)
    ids3 = jax.random.randint(k3_ids, (B3, T3), 0, V3, dtype=jnp.int32)
    out3 = jax.block_until_ready(EmbeddingPackable(table3, path="gather")(ids3))
    ref3 = jnp.take(table3, ids3, axis=0)
    assert out3.shape == (B3, T3, D3)
    assert jnp.allclose(out3, ref3, atol=1e-5), "gather path mismatch"

    print("KERNEL_OK")
</pallas_src>

<mosaic_0001>
module attributes {stable_mosaic.version = 11 : i64} {
  func.func @_embed_resident_kernel(%arg0: i32, %arg1: memref<16x1xi32, #tpu.memory_space<vmem>>, %arg2: memref<32x128xf32, #tpu.memory_space<vmem>>, %arg3: memref<16x128xf32, #tpu.memory_space<vmem>>) attributes {dimension_semantics = [#tpu.dimension_semantics<parallel>], iteration_bounds = array<i64: 1>, scalar_prefetch = 0 : i64, scratch_operands = 0 : i64, tpu.core_type = #tpu.core_type<tc>, window_params = [{transform_indices = @transform_0, window_bounds = array<i64: 16, 1>}, {pipeline_mode = #tpu.pipeline_mode<synchronous>, transform_indices = @transform_1, window_bounds = array<i64: 32, 128>}, {transform_indices = @transform_2, window_bounds = array<i64: 16, 128>}]} {
    %c0 = arith.constant 0 : index
    %c0_0 = arith.constant 0 : index
    %0 = vector.load %arg1[%c0, %c0_0] : memref<16x1xi32, #tpu.memory_space<vmem>>, vector<16x1xi32>
    %1 = tpu.iota {dimensions = array<i32: 1>} : vector<16x32xi32>
    %2 = vector.broadcast %0 : vector<16x1xi32> to vector<16x32xi32>
    %3 = arith.cmpi eq, %2, %1 : vector<16x32xi32>
    %4 = arith.extui %3 : vector<16x32xi1> to vector<16x32xi32>
    %5 = arith.sitofp %4 : vector<16x32xi32> to vector<16x32xf32>
    %c0_1 = arith.constant 0 : index
    %c0_2 = arith.constant 0 : index
    %6 = vector.load %arg2[%c0_1, %c0_2] : memref<32x128xf32, #tpu.memory_space<vmem>>, vector<32x128xf32>
    %cst = arith.constant dense<0.000000e+00> : vector<16x128xf32>
    %7 = tpu.matmul %5, %6, %cst {dimension_numbers = #tpu.dot_dimension_numbers<[1], [0], [0], [1], [0, 0, 1, 1], [], []>} : vector<16x32xf32>, vector<32x128xf32>, vector<16x128xf32> -> vector<16x128xf32>
    %c0_3 = arith.constant 0 : index
    %c0_4 = arith.constant 0 : index
    %8 = vector.load %arg3[%c0_3, %c0_4] : memref<16x128xf32, #tpu.memory_space<vmem>>, vector<16x128xf32>
    tpu.vector_store %arg3[%c0_3, %c0_4], %7 {strides = array<i32>} : memref<16x128xf32, #tpu.memory_space<vmem>>, vector<16x128xf32>,
    return
  }
  func.func @transform_0(%arg0: i32) -> (i32, i32) {
    %c0_i32 = arith.constant 0 : i32
    %c0_i32_0 = arith.constant 0 : i32
    return %arg0, %c0_i32 : i32, i32
  }
  func.func @transform_1(%arg0: i32) -> (i32, i32) {
    %c0_i32 = arith.constant 0 : i32
    %c0_i32_0 = arith.constant 0 : i32
    %c0_i32_1 = arith.constant 0 : i32
    return %c0_i32, %c0_i32_0 : i32, i32
  }
  func.func @transform_2(%arg0: i32) -> (i32, i32) {
    %c0_i32 = arith.constant 0 : i32
    %c0_i32_0 = arith.constant 0 : i32
    return %arg0, %c0_i32 : i32, i32
  }
}

</mosaic_0001>

<bundles_post_ra>
// kernel: tpu_custom_call.1
= control target key start
LH: loop header
LB: loop body
LE: loop exit
PB: predicated region body
PF: predicated region fallthrough
CT: control target
= control target key end

     0   :  { %7 = vsyncpa [#allocation3], 0  ;;  %s288_s0 = inlined_call_operand.vmem [shape: s32[16,1], index: 0, kind: input, shape index: {}]   ;;  %s289_s1 = inlined_call_operand.hbm [shape: f32[32,128], index: 1, kind: input, shape index: {}]   ;;  %s290_s2 = inlined_call_operand.hbm [shape: f32[16,128], index: 2, kind: output, shape index: {}]  }
   0x1   :  { %8 = vsyncpa [#allocation4], 0  ;;  %s231_s9 = smov [#allocation2]   ;;  %s183_s13 = scalar_lea.hbm %s289_s1, 512 }
   0x2   :  { %s16_s10 = sshll.u32 %s231_s9, 4  ;;  %p184_p0 = scmp.ne.s32.totalorder %s289_s1, %s183_s13  ;;  %s17_s10 = int_to_ptr.vmem [resolvable:$true] %s16_s10 }
   0x3   :  { %p187_p1 = scmp.lt.u32.totalorder %s183_s13, %s289_s1 }
   0x5   :  { %p189_p2 = pnand %p187_p1, %p184_p0 }
   0x7   :  { %192 = shalt.err (!%p189_p2)
}
   0x8   :  { %s193_s18 = scalar_lea.vmem %s17_s10, 512  ;;  %p198_p4 = scmp.lt.s32.totalorder %s17_s10, %s17_s10 }
   0x9   :  { %p194_p3 = scmp.ne.s32.totalorder %s17_s10, %s193_s18  ;;  %p199_p5 = scmp.lt.s32.totalorder %s193_s18, %s193_s18 }
   0xb   :  { %p200_p6 = por %p199_p5, %p198_p4 }
   0xd   :  { %p201_p7 = pnand %p200_p6, %p194_p3 }
   0xf   :  { %204 = shalt.err (!%p201_p7)
}
  0x10   :  { %s232_s19 = smov 128   ;;  %s233_s20 = smov 8  }
  0x11   :  { %22 = dma.hbm_to_vmem [thread:$0]  %s289_s1, 512, %s17_s10, [#allocation3], %s232_s19, %s232_s19, %s233_s20  }
  0x12   :  { %227 = dma.done.wait [#allocation3], 512  }
  0x13   :  { %228 = vsyncadd [#allocation3], 4294966784  ;;  %v234_v0 = vmov 0   ;;  %v26_v1 = vld [vmem:[%s288_s0] sm:$0xff]  ;;  %v43_v3 = vld [vmem:[#allocation2 + $0x8] sm:$0xff]  ;;  %v28_v9 = vlaneseq  ;;  %vm46_vm0 = vcmask 261120  }
  0x14   :  { %182 = vset.pattern.permute.xlu0 %v234_v0  ;;  %v42_v2 = vld [vmem:[#allocation2] sm:$0xff]  ;;  %v44_v4 = vld [vmem:[#allocation2 + $0x10] sm:$0xff]  ;;  %v45_v5 = vld [vmem:[#allocation2 + $0x18] sm:$0xff]  ;;  %v235_v12 = vmov 0.0  }
  0x15   :  { %31 = vperm.xlu0 %182, %v26_v1   ;;  %v27_v6 = vld [vmem:[%s288_s0 + $0x8] sm:$0xff]  ;;  %v168_v7 = vpack.c.bf16 %v43_v3, %v42_v2  ;;  %v172_v8 = vpack.c.bf16 %v45_v5, %v44_v4  ;;  %v29_v10 = vand.u32 127, %v28_v9  ;;  %s236_s0 = smov [#allocation5]  }
  0x16   :  { %s135_s1 = sshll.u32 %s236_s0, 4  ;;  %s136_s1 = int_to_ptr.vmem [resolvable:$true] %s135_s1 }
  0x17   :  { %169 = vmatprep.subr.bf16.mxu0 %v168_v7  ;;  %s205_s27 = scalar_lea.vmem %s136_s1, 256  ;;  %p210_p9 = scmp.lt.s32.totalorder %s136_s1, %s136_s1 }
  0x18   :  { %171 = vmatpush3.bf16.msra.mxu0 %v168_v7  ;;  %p206_p8 = scmp.ne.s32.totalorder %s136_s1, %s205_s27  ;;  %p211_p10 = scmp.lt.s32.totalorder %s205_s27, %s205_s27 }
  0x19   :  { %34 = vperm.xlu0 %182, %v27_v6   ;;  %173 = vmatprep.subr.bf16.mxu0 %v172_v8 }
  0x1a   :  { %p212_p11 = por %p211_p10, %p210_p9 }
  0x1c   :  { %175 = vmatpush3.bf16.msra.mxu0 %v172_v8  ;;  %p213_p12 = pnand %p212_p11, %p206_p8 }
  0x94   :  { %v32_v11 = vpop.permute.xlu0 %31 }
  0x95   :  { %vm36_vm1 = vcmp.eq.s32.totalorder %v32_v11, %v29_v10 }
  0x96   :  { %v147_v13 = vsel %vm36_vm1, 1.0, %v235_v12 }
  0x97   :  { %165 = vmatprep.mubr.msk.f32.mxu0 %vm46_vm0, %v147_v13 }
  0x98   :  { %v35_v14 = vpop.permute.xlu0 %34 }
  0x99   :  { %vm37_vm2 = vcmp.eq.s32.totalorder %v35_v14, %v29_v10 }
  0x9a   :  { %v148_v15 = vsel %vm37_vm2, 1.0, %v235_v12 }
  0x9b   :  { %166 = vmatmul.mubr.msk.f32.vlgmr.msra.gmra.mrb[0].mxu0 %vm46_vm0, %v148_v15 }
 0x16e   :  { %v167_v16 = vpop.f32.mrb[0].mxu0 }
 0x16f   :  { %129 = vst [vmem:[#allocation5 + $0x8] sm:$0xff] %v167_v16  ;;  %v119_v17 = vpop.f32.mrb[1].mxu0 }
 0x170   :  { %128 = vst [vmem:[#allocation5] sm:$0xff] %v119_v17 }
 0x171   :  { %216 = shalt.err (!%p213_p12)
}
 0x172   :  { %s217_s30 = scalar_lea.hbm %s290_s2, 256 }
 0x173   :  { %p218_p13 = scmp.ne.s32.totalorder %s290_s2, %s217_s30  ;;  %p221_p0 = scmp.lt.u32.totalorder %s217_s30, %s290_s2 }
 0x175   :  { %p223_p1 = pnand %p221_p0, %p218_p13 }
 0x177   :  { %226 = shalt.err (!%p223_p1)
}
 0x178   :  { %141 = dma.vmem_to_hbm [thread:$0]  %s136_s1, 256, %s290_s2, [#allocation4], %s232_s19, %s232_s19, %s233_s20  }
 0x179   :  { %229 = dma.done.wait [#allocation4], 256  }
 0x17a   :  { %230 = vsyncadd [#allocation4], 4294967040 }
 0x17b   :  { %145 = vsyncpa [#allocation3], 1 }
 0x17c   :  { %146 = vsyncpa [#allocation4], 1 }

</bundles_post_ra>
